<compile_context>
chip_gen: v5e
topology: v5e:2x2
jax: 0.10.0
libtpu: 0.0.40
codegen_flags: <defaults>
</compile_context>

<pallas_src>
import functools

import jax
import jax.numpy as jnp
from jax import lax
from jax.experimental import pallas as pl
from jax.experimental.pallas import tpu as pltpu

# ----- hyperparameters (module defaults / deterministic synthetic configer) -
DELTA_V = 0.5
DELTA_D = 1.5
ALPHA = 1.0
BETA = 1.0
GAMMA = 0.001
IGNORE_LABEL = -1
MAX_VIEWS = 4            # configer.get('contrast', 'max_views')
NUM_CLASSES = 5          # candidate class ids 0..NUM_CLASSES-1
K_PAD = 8                # padded class count (sublane friendly)
MAX_TILE_HW = 4096       # target pixels (lanes) streamed per grid step
MAX_BATCH_BLOCK = 8      # cap on the per-step batch unroll for small hw


def _cdiv(a, b):
    return -(-a // b)


def _chip_config():
    """(n_parallel_splits, vmem_limit_bytes) per TPU generation."""
    try:
        kind = jax.devices()[0].device_kind.lower()
    except Exception:
        kind = ""
    if ("v7" in kind) or ("7x" in kind) or ("tpu7" in kind):
        # v7x: 2 TensorCores/chip, 64 MiB physical VMEM per core.
        return 2, 48 * 1024 * 1024
    # v5e / v6e: 1 TensorCore/chip, 128 MiB physical VMEM.
    return 1, 64 * 1024 * 1024


def _tile_mask(steps_per_split, n_tiles, total_steps, tile_hw, hw):
    """(1, tile_hw) bool mask: True for real pixels of a real (non-dup) step."""
    s = pl.program_id(0)
    t = pl.program_id(1)
    logical = s * steps_per_split + t
    step_ok = logical < total_steps
    clamped = jnp.minimum(logical, total_steps - 1)
    tile = clamped % n_tiles                     # matches what the DMA loaded
    base = tile * tile_hw
    lane = lax.broadcasted_iota(jnp.int32, (1, tile_hw), 1)
    return jnp.logical_and(step_ok, (base + lane) < hw)


# ---------------- Kernel A: per-class feature sums & counts ----------------
def class_stats_kernel(feats_ref, labels_ref, sums_ref, counts_ref, *,
                       steps_per_split, n_tiles, total_steps, hw, need_mask):
    # feats_ref:  (Bblk, C, tile_hw) f32/bf16 (NCHW-native, lane-dense)
    # labels_ref: (Bblk, 1, tile_hw) i32
    # sums_ref:   (K, C) f32 accumulator (resident; one slice per split)
    # counts_ref: (K, 1) f32 accumulator
    @pl.when(pl.program_id(1) == 0)
    def _():
        sums_ref[...] = jnp.zeros_like(sums_ref)
        counts_ref[...] = jnp.zeros_like(counts_ref)

    bblk, _, tile_hw = feats_ref.shape
    K = sums_ref.shape[0]
    cls_ids = lax.broadcasted_iota(jnp.int32, (K, tile_hw), 0)

    if need_mask:
        mask = _tile_mask(steps_per_split, n_tiles, total_steps, tile_hw, hw)
        maskf = mask.astype(jnp.float32)

    acc_s = jnp.zeros(sums_ref.shape, jnp.float32)
    acc_c = jnp.zeros(counts_ref.shape, jnp.float32)
    for b in range(bblk):                                   # static unroll
        f = feats_ref[b].astype(jnp.float32)                # (C, T)
        oh = labels_ref[b] == cls_ids                       # (K, T) bool
        if need_mask:
            f = f * maskf                                   # kill garbage/NaN tail
            oh = jnp.logical_and(oh, mask)
        onehot = oh.astype(jnp.float32)
        # (K, C) += onehot contracted with feats over the pixel/lane axis (MXU)
        acc_s = acc_s + lax.dot_general(
            onehot, f, (((1,), (1,)), ((), ())),
            preferred_element_type=jnp.float32)
        acc_c = acc_c + jnp.sum(onehot, axis=1, keepdims=True)

    sums_ref[...] += acc_s
    counts_ref[...] += acc_c


# ---------------- Kernel B: per-pixel hinge variance term -------------------
def var_loss_kernel(feats_ref, labels_ref, means_ref, w_ref, var_ref, *,
                    steps_per_split, n_tiles, total_steps, hw, need_mask):
    # feats_ref (Bblk, C, T), labels_ref (Bblk, 1, T), means_ref (K, C),
    # w_ref (1, K) = valid/count, var_ref (1, 1) accumulator per split.
    @pl.when(pl.program_id(1) == 0)
    def _():
        var_ref[...] = jnp.zeros_like(var_ref)

    bblk, _, tile_hw = feats_ref.shape
    K, C = means_ref.shape
    cls_ids = lax.broadcasted_iota(jnp.int32, (K, tile_hw), 0)
    ones_row = jnp.ones((1, C), jnp.float32)                # MXU reduce vector
    means = means_ref[...]
    w = w_ref[...]

    if need_mask:
        mask = _tile_mask(steps_per_split, n_tiles, total_steps, tile_hw, hw)
        maskf = mask.astype(jnp.float32)

    acc = jnp.float32(0.0)
    for b in range(bblk):                                   # static unroll
        f = feats_ref[b].astype(jnp.float32)                # (C, T)
        oh = labels_ref[b] == cls_ids                       # (K, T)
        if need_mask:
            f = f * maskf
            oh = jnp.logical_and(oh, mask)
        onehot = oh.astype(jnp.float32)
        # per-pixel cluster mean: (C, T) = means^T @ onehot (ignored pixels -> 0)
        mean_pix = lax.dot_general(
            means, onehot, (((0,), (0,)), ((), ())),
            preferred_element_type=jnp.float32)
        diff = f - mean_pix
        # ||diff||^2 over channels on the MXU instead of a sublane reduce
        nrm2 = jnp.dot(ones_row, diff * diff,
                       preferred_element_type=jnp.float32)  # (1, T)
        d = jnp.sqrt(nrm2) - DELTA_V
        hinge_sq = jnp.where(d > 0, d * d, 0.0)
        # per-pixel weight = valid(label) / count(label)  (0 for ignored classes)
        w_pix = jnp.dot(w, onehot, preferred_element_type=jnp.float32)  # (1, T)
        acc = acc + jnp.sum(hinge_sq * w_pix)

    var_ref[...] += acc


# ---------------- wrapper ----------------------------------------------------
def discrim_loss(feats_nchw, labels_bhw):
    B, C, H, W = feats_nchw.shape
    _, Hl, Wl = labels_bhw.shape
    f32 = jnp.float32

    # nearest-neighbor label resize to (H, W)  (== F.interpolate mode='nearest')
    ri = (jnp.arange(H) * Hl) // H
    ci = (jnp.arange(W) * Wl) // W
    lbl = labels_bhw[:, ri][:, :, ci].astype(jnp.int32)          # (B, H, W)

    hw = H * W
    # NCHW-native flatten (free reshape; no transpose / no pad copy of feats)
    feats = feats_nchw.reshape(B, C, hw)
    labels = lbl.reshape(B, 1, hw)

    # ---- tiling: big lane-dense tiles; batch-block when hw is small --------
    if hw >= MAX_TILE_HW:
        tile_hw = MAX_TILE_HW
        bblk = 1
    else:
        tile_hw = hw                          # full spatial extent per block
        bblk = 1
        for d in range(1, B + 1):
            if B % d == 0 and d * hw <= MAX_TILE_HW and d <= MAX_BATCH_BLOCK:
                bblk = d
    n_tiles = _cdiv(hw, tile_hw)
    n_bblk = B // bblk
    total_steps = n_bblk * n_tiles

    nsplit, vmem_limit = _chip_config()
    nsplit = min(nsplit, total_steps)
    steps_per_split = _cdiv(total_steps, nsplit)
    # mask only needed for a ragged spatial tail or duplicated (clamped) steps
    need_mask = (hw % tile_hw != 0) or (total_steps % nsplit != 0)

    K = K_PAD

    def data_idx(s, t):
        logical = s * steps_per_split + t
        clamped = jnp.minimum(logical, total_steps - 1)   # dup steps re-read last
        if n_tiles == 1:
            return (clamped, 0, 0)
        if n_bblk == 1:
            return (0, 0, clamped)
        return (clamped // n_tiles, 0, clamped % n_tiles)

    feats_spec = pl.BlockSpec((bblk, C, tile_hw), data_idx)
    labels_spec = pl.BlockSpec((bblk, 1, tile_hw), data_idx)
    grid = (nsplit, steps_per_split)
    cparams = pltpu.CompilerParams(
        dimension_semantics=("parallel", "arbitrary"),
        vmem_limit_bytes=vmem_limit)
    static = dict(steps_per_split=steps_per_split, n_tiles=n_tiles,
                  total_steps=total_steps, hw=hw, need_mask=need_mask)

    # ---- pass 1: per-class sums / counts (one accumulator slice per split) --
    sums, counts = pl.pallas_call(
        functools.partial(class_stats_kernel, **static),
        out_shape=(jax.ShapeDtypeStruct((nsplit, K, C), f32),
                   jax.ShapeDtypeStruct((nsplit, K, 1), f32)),
        grid_spec=pltpu.PrefetchScalarGridSpec(
            num_scalar_prefetch=0, grid=grid,
            in_specs=[feats_spec, labels_spec],
            out_specs=[pl.BlockSpec((None, K, C), lambda s, t: (s, 0, 0)),
                       pl.BlockSpec((None, K, 1), lambda s, t: (s, 0, 0))]),
        compiler_params=cparams,
    )(feats, labels)

    counts_k = jnp.sum(counts, axis=0)[:, 0]                     # (K,)
    sums_k = jnp.sum(sums, axis=0)                               # (K, C)
    valid = counts_k > MAX_VIEWS                                 # present & > max_views
    safe_cnt = jnp.maximum(counts_k, 1.0)
    means = jnp.where(valid[:, None], sums_k / safe_cnt[:, None], 0.0)
    w = (valid.astype(f32) / safe_cnt)[None, :]                  # (1, K)

    # ---- pass 2: hinge variance term ----------------------------------------
    var = pl.pallas_call(
        functools.partial(var_loss_kernel, **static),
        out_shape=jax.ShapeDtypeStruct((nsplit, 1, 1), f32),
        grid_spec=pltpu.PrefetchScalarGridSpec(
            num_scalar_prefetch=0, grid=grid,
            in_specs=[feats_spec, labels_spec,
                      pl.BlockSpec((K, C), lambda s, t: (0, 0)),
                      pl.BlockSpec((1, K), lambda s, t: (0, 0))],
            out_specs=pl.BlockSpec((None, 1, 1), lambda s, t: (s, 0, 0))),
        compiler_params=cparams,
    )(feats, labels, means, w)

    # ---- tail (tiny K x C / K x K math) done in plain XLA --------------------
    loss_var = jnp.sum(var)
    valid_f = valid.astype(f32)
    tc = jnp.sum(valid_f)                                        # total_classes

    mean_nrm = jnp.sqrt(jnp.sum(means * means, axis=1))          # (K,)
    loss_reg = jnp.sum(mean_nrm * valid_f)

    diff3 = means[:, None, :] - means[None, :, :]                # (K, K, C)
    pd = jnp.sqrt(jnp.sum(diff3 * diff3, axis=-1))               # (K, K)
    dd = 2.0 * DELTA_D - pd
    idx = jnp.arange(K)
    last_valid = jnp.max(jnp.where(valid, idx, -1))
    # "b" runs over the first total_classes-1 clusters (original code quirk):
    # a==b pairs included, the largest valid class id never appears as "b".
    bvalid_f = jnp.where(valid & (idx != last_valid), 1.0, 0.0)  # (K,)
    pair = jnp.where(dd > 0, dd * dd, 0.0) * valid_f[:, None] * bvalid_f[None, :]
    loss_dist = jnp.sum(pair)

    denom = jnp.maximum(tc, 1.0)
    denom_pair = jnp.maximum(tc * (tc - 1.0), 1.0)
    loss = (ALPHA * loss_var / denom
            + BETA * loss_dist / denom_pair
            + GAMMA * loss_reg / denom)
    # Original divides by tc and tc*(tc-1) (NaN/Inf if <2 classes survive the
    # filter); guard the degenerate case with 0 instead of NaN.
    return jnp.where(tc > 1.0, loss, 0.0)


if __name__ == "__main__":
    key = jax.random.PRNGKey(0)
    kf, kl = jax.random.split(key)
    B, C, H, W = 2, 32, 16, 16
    # layout: feats is NCHW (batch, proj_dim, H, W), labels (batch, Hl, Wl)
    # (feats may also be streamed as bf16 for half the HBM traffic; kernels
    #  upcast in-register and accumulate in f32)
    feats = jax.random.normal(kf, (B, C, H, W), dtype=jnp.float32)
    labels = jax.random.randint(kl, (B, 8, 8), minval=-1, maxval=NUM_CLASSES,
                                dtype=jnp.int32)                 # {-1..4}

    loss = jax.jit(discrim_loss)(feats, labels)
    jax.block_until_ready(loss)
    print("KERNEL_OK")
</pallas_src>

<mosaic_0001>
module attributes {stable_mosaic.version = 11 : i64} {
  func.func @class_stats_kernel(%arg0: i32, %arg1: i32, %arg2: memref<2x32x256xf32, #tpu.memory_space<vmem>>, %arg3: memref<2x1x256xi32, #tpu.memory_space<vmem>>, %arg4: memref<1x8x32xf32, #tpu.memory_space<vmem>>, %arg5: memref<1x8x1xf32, #tpu.memory_space<vmem>>) attributes {dimension_semantics = [#tpu.dimension_semantics<parallel>, #tpu.dimension_semantics<arbitrary>], iteration_bounds = array<i64: 1, 1>, scalar_prefetch = 0 : i64, scratch_operands = 0 : i64, tpu.core_type = #tpu.core_type<tc>, window_params = [{transform_indices = @transform_0, window_bounds = array<i64: 2, 32, 256>}, {transform_indices = @transform_1, window_bounds = array<i64: 2, 1, 256>}, {transform_indices = @transform_2, window_bounds = array<i64: 1, 8, 32>}, {transform_indices = @transform_3, window_bounds = array<i64: 1, 8, 1>}]} {
    %c0_i32 = arith.constant 0 : i32
    %0 = arith.cmpi eq, %arg1, %c0_i32 : i32
    %1 = arith.extui %0 : i1 to i32
    %c0_i32_0 = arith.constant 0 : i32
    %2 = arith.cmpi ne, %1, %c0_i32_0 : i32
    scf.if %2 {
      %cst_28 = arith.constant 0.000000e+00 : f32
      %44 = vector.broadcast %cst_28 : f32 to vector<8x32xf32>
      %c0_29 = arith.constant 0 : index
      %c0_30 = arith.constant 0 : index
      %c0_31 = arith.constant 0 : index
      %45 = vector.load %arg4[%c0_29, %c0_30, %c0_31] : memref<1x8x32xf32, #tpu.memory_space<vmem>>, vector<1x8x32xf32>
      %46 = vector.shape_cast %45 : vector<1x8x32xf32> to vector<8x32xf32>
      %47 = vector.shape_cast %44 : vector<8x32xf32> to vector<1x8x32xf32>
      tpu.vector_store %arg4[%c0_29, %c0_30, %c0_31], %47 {strides = array<i32>} : memref<1x8x32xf32, #tpu.memory_space<vmem>>, vector<1x8x32xf32>,
      %cst_32 = arith.constant 0.000000e+00 : f32
      %48 = vector.broadcast %cst_32 : f32 to vector<8x1xf32>
      %c0_33 = arith.constant 0 : index
      %c0_34 = arith.constant 0 : index
      %c0_35 = arith.constant 0 : index
      %49 = vector.load %arg5[%c0_33, %c0_34, %c0_35] : memref<1x8x1xf32, #tpu.memory_space<vmem>>, vector<1x8x1xf32>
      %50 = vector.shape_cast %49 : vector<1x8x1xf32> to vector<8x1xf32>
      %51 = vector.shape_cast %48 : vector<8x1xf32> to vector<1x8x1xf32>
      tpu.vector_store %arg5[%c0_33, %c0_34, %c0_35], %51 {strides = array<i32>} : memref<1x8x1xf32, #tpu.memory_space<vmem>>, vector<1x8x1xf32>,
    } else {
    }
    %3 = tpu.iota {dimensions = array<i32: 0>} : vector<8x256xi32>
    %cst = arith.constant 0.000000e+00 : f32
    %4 = vector.broadcast %cst : f32 to vector<8x32xf32>
    %cst_1 = arith.constant 0.000000e+00 : f32
    %5 = vector.broadcast %cst_1 : f32 to vector<8x1xf32>
    %c0 = arith.constant 0 : index
    %c0_2 = arith.constant 0 : index
    %c0_3 = arith.constant 0 : index
    %6 = vector.load %arg2[%c0, %c0_2, %c0_3] : memref<2x32x256xf32, #tpu.memory_space<vmem>>, vector<1x32x256xf32>
    %7 = vector.shape_cast %6 : vector<1x32x256xf32> to vector<32x256xf32>
    %c0_4 = arith.constant 0 : index
    %c0_5 = arith.constant 0 : index
    %c0_6 = arith.constant 0 : index
    %8 = vector.load %arg3[%c0_4, %c0_5, %c0_6] : memref<2x1x256xi32, #tpu.memory_space<vmem>>, vector<1x1x256xi32>
    %9 = vector.shape_cast %8 : vector<1x1x256xi32> to vector<1x256xi32>
    %10 = vector.broadcast %9 : vector<1x256xi32> to vector<8x256xi32>
    %11 = arith.cmpi eq, %10, %3 : vector<8x256xi32>
    %12 = arith.extui %11 : vector<8x256xi1> to vector<8x256xi32>
    %13 = arith.sitofp %12 : vector<8x256xi32> to vector<8x256xf32>
    %cst_7 = arith.constant dense<0.000000e+00> : vector<8x32xf32>
    %14 = tpu.matmul %13, %7, %cst_7 {dimension_numbers = #tpu.dot_dimension_numbers<[1], [1], [0], [0], [0, 0, 1, 0], [], []>} : vector<8x256xf32>, vector<32x256xf32>, vector<8x32xf32> -> vector<8x32xf32>
    %15 = arith.addf %4, %14 : vector<8x32xf32>
    %cst_8 = arith.constant dense<0.000000e+00> : vector<8xf32>
    %16 = vector.multi_reduction <add>, %13, %cst_8 [1] : vector<8x256xf32> to vector<8xf32>
    %17 = vector.shape_cast %16 : vector<8xf32> to vector<8x1xf32>
    %18 = arith.addf %5, %17 : vector<8x1xf32>
    %c1 = arith.constant 1 : index
    %c0_9 = arith.constant 0 : index
    %c0_10 = arith.constant 0 : index
    %19 = vector.load %arg2[%c1, %c0_9, %c0_10] : memref<2x32x256xf32, #tpu.memory_space<vmem>>, vector<1x32x256xf32>
    %20 = vector.shape_cast %19 : vector<1x32x256xf32> to vector<32x256xf32>
    %c1_11 = arith.constant 1 : index
    %c0_12 = arith.constant 0 : index
    %c0_13 = arith.constant 0 : index
    %21 = vector.load %arg3[%c1_11, %c0_12, %c0_13] : memref<2x1x256xi32, #tpu.memory_space<vmem>>, vector<1x1x256xi32>
    %22 = vector.shape_cast %21 : vector<1x1x256xi32> to vector<1x256xi32>
    %23 = vector.broadcast %22 : vector<1x256xi32> to vector<8x256xi32>
    %24 = arith.cmpi eq, %23, %3 : vector<8x256xi32>
    %25 = arith.extui %24 : vector<8x256xi1> to vector<8x256xi32>
    %26 = arith.sitofp %25 : vector<8x256xi32> to vector<8x256xf32>
    %cst_14 = arith.constant dense<0.000000e+00> : vector<8x32xf32>
    %27 = tpu.matmul %26, %20, %cst_14 {dimension_numbers = #tpu.dot_dimension_numbers<[1], [1], [0], [0], [0, 0, 1, 0], [], []>} : vector<8x256xf32>, vector<32x256xf32>, vector<8x32xf32> -> vector<8x32xf32>
    %28 = arith.addf %15, %27 : vector<8x32xf32>
    %cst_15 = arith.constant dense<0.000000e+00> : vector<8xf32>
    %29 = vector.multi_reduction <add>, %26, %cst_15 [1] : vector<8x256xf32> to vector<8xf32>
    %30 = vector.shape_cast %29 : vector<8xf32> to vector<8x1xf32>
    %31 = arith.addf %18, %30 : vector<8x1xf32>
    %c0_16 = arith.constant 0 : index
    %c0_17 = arith.constant 0 : index
    %c0_18 = arith.constant 0 : index
    %32 = vector.load %arg4[%c0_16, %c0_17, %c0_18] : memref<1x8x32xf32, #tpu.memory_space<vmem>>, vector<1x8x32xf32>
    %33 = vector.shape_cast %32 : vector<1x8x32xf32> to vector<8x32xf32>
    %34 = arith.addf %33, %28 : vector<8x32xf32>
    %c0_19 = arith.constant 0 : index
    %c0_20 = arith.constant 0 : index
    %c0_21 = arith.constant 0 : index
    %35 = vector.load %arg4[%c0_19, %c0_20, %c0_21] : memref<1x8x32xf32, #tpu.memory_space<vmem>>, vector<1x8x32xf32>
    %36 = vector.shape_cast %35 : vector<1x8x32xf32> to vector<8x32xf32>
    %37 = vector.shape_cast %34 : vector<8x32xf32> to vector<1x8x32xf32>
    tpu.vector_store %arg4[%c0_19, %c0_20, %c0_21], %37 {strides = array<i32>} : memref<1x8x32xf32, #tpu.memory_space<vmem>>, vector<1x8x32xf32>,
    %c0_22 = arith.constant 0 : index
    %c0_23 = arith.constant 0 : index
    %c0_24 = arith.constant 0 : index
    %38 = vector.load %arg5[%c0_22, %c0_23, %c0_24] : memref<1x8x1xf32, #tpu.memory_space<vmem>>, vector<1x8x1xf32>
    %39 = vector.shape_cast %38 : vector<1x8x1xf32> to vector<8x1xf32>
    %40 = arith.addf %39, %31 : vector<8x1xf32>
    %c0_25 = arith.constant 0 : index
    %c0_26 = arith.constant 0 : index
    %c0_27 = arith.constant 0 : index
    %41 = vector.load %arg5[%c0_25, %c0_26, %c0_27] : memref<1x8x1xf32, #tpu.memory_space<vmem>>, vector<1x8x1xf32>
    %42 = vector.shape_cast %41 : vector<1x8x1xf32> to vector<8x1xf32>
    %43 = vector.shape_cast %40 : vector<8x1xf32> to vector<1x8x1xf32>
    tpu.vector_store %arg5[%c0_25, %c0_26, %c0_27], %43 {strides = array<i32>} : memref<1x8x1xf32, #tpu.memory_space<vmem>>, vector<1x8x1xf32>,
    return
  }
  func.func @transform_0(%arg0: i32, %arg1: i32) -> (i32, i32, i32) {
    %c1_i32 = arith.constant 1 : i32
    %0 = arith.muli %arg0, %c1_i32 : i32
    %1 = arith.addi %0, %arg1 : i32
    %c0_i32 = arith.constant 0 : i32
    %2 = arith.minsi %1, %c0_i32 : i32
    %c0_i32_0 = arith.constant 0 : i32
    %c0_i32_1 = arith.constant 0 : i32
    %c0_i32_2 = arith.constant 0 : i32
    return %2, %c0_i32_0, %c0_i32_1 : i32, i32, i32
  }
  func.func @transform_1(%arg0: i32, %arg1: i32) -> (i32, i32, i32) {
    %c1_i32 = arith.constant 1 : i32
    %0 = arith.muli %arg0, %c1_i32 : i32
    %1 = arith.addi %0, %arg1 : i32
    %c0_i32 = arith.constant 0 : i32
    %2 = arith.minsi %1, %c0_i32 : i32
    %c0_i32_0 = arith.constant 0 : i32
    %c0_i32_1 = arith.constant 0 : i32
    %c0_i32_2 = arith.constant 0 : i32
    return %2, %c0_i32_0, %c0_i32_1 : i32, i32, i32
  }
  func.func @transform_2(%arg0: i32, %arg1: i32) -> (i32, i32, i32) {
    %c0_i32 = arith.constant 0 : i32
    %c0_i32_0 = arith.constant 0 : i32
    %c0_i32_1 = arith.constant 0 : i32
    return %arg0, %c0_i32, %c0_i32_0 : i32, i32, i32
  }
  func.func @transform_3(%arg0: i32, %arg1: i32) -> (i32, i32, i32) {
    %c0_i32 = arith.constant 0 : i32
    %c0_i32_0 = arith.constant 0 : i32
    %c0_i32_1 = arith.constant 0 : i32
    return %arg0, %c0_i32, %c0_i32_0 : i32, i32, i32
  }
}

module attributes {stable_mosaic.version = 11 : i64} {
  func.func @var_loss_kernel(%arg0: i32, %arg1: i32, %arg2: memref<2x32x256xf32, #tpu.memory_space<vmem>>, %arg3: memref<2x1x256xi32, #tpu.memory_space<vmem>>, %arg4: memref<8x32xf32, #tpu.memory_space<vmem>>, %arg5: memref<1x8xf32, #tpu.memory_space<vmem>>, %arg6: memref<1x1x1xf32, #tpu.memory_space<vmem>>) attributes {dimension_semantics = [#tpu.dimension_semantics<parallel>, #tpu.dimension_semantics<arbitrary>], iteration_bounds = array<i64: 1, 1>, scalar_prefetch = 0 : i64, scratch_operands = 0 : i64, tpu.core_type = #tpu.core_type<tc>, window_params = [{transform_indices = @transform_0, window_bounds = array<i64: 2, 32, 256>}, {transform_indices = @transform_1, window_bounds = array<i64: 2, 1, 256>}, {pipeline_mode = #tpu.pipeline_mode<synchronous>, transform_indices = @transform_2, window_bounds = array<i64: 8, 32>}, {pipeline_mode = #tpu.pipeline_mode<synchronous>, transform_indices = @transform_3, window_bounds = array<i64: 1, 8>}, {transform_indices = @transform_4, window_bounds = array<i64: 1, 1, 1>}]} {
    %c0_i32 = arith.constant 0 : i32
    %0 = arith.cmpi eq, %arg1, %c0_i32 : i32
    %1 = arith.extui %0 : i1 to i32
    %c0_i32_0 = arith.constant 0 : i32
    %2 = arith.cmpi ne, %1, %c0_i32_0 : i32
    scf.if %2 {
      %cst_36 = arith.constant 0.000000e+00 : f32
      %68 = vector.broadcast %cst_36 : f32 to vector<1x1xf32>
      %c0_37 = arith.constant 0 : index
      %c0_38 = arith.constant 0 : index
      %c0_39 = arith.constant 0 : index
      %69 = vector.load %arg6[%c0_37, %c0_38, %c0_39] : memref<1x1x1xf32, #tpu.memory_space<vmem>>, vector<1x1x1xf32>
      %70 = vector.shape_cast %69 : vector<1x1x1xf32> to vector<1x1xf32>
      %71 = vector.shape_cast %68 : vector<1x1xf32> to vector<1x1x1xf32>
      tpu.vector_store %arg6[%c0_37, %c0_38, %c0_39], %71 {strides = array<i32>} : memref<1x1x1xf32, #tpu.memory_space<vmem>>, vector<1x1x1xf32>,
    } else {
    }
    %3 = tpu.iota {dimensions = array<i32: 0>} : vector<8x256xi32>
    %cst = arith.constant 1.000000e+00 : f32
    %4 = vector.broadcast %cst : f32 to vector<1x32xf32>
    %c0 = arith.constant 0 : index
    %c0_1 = arith.constant 0 : index
    %5 = vector.load %arg4[%c0, %c0_1] : memref<8x32xf32, #tpu.memory_space<vmem>>, vector<8x32xf32>
    %c0_2 = arith.constant 0 : index
    %c0_3 = arith.constant 0 : index
    %6 = vector.load %arg5[%c0_2, %c0_3] : memref<1x8xf32, #tpu.memory_space<vmem>>, vector<1x8xf32>
    %c0_4 = arith.constant 0 : index
    %c0_5 = arith.constant 0 : index
    %c0_6 = arith.constant 0 : index
    %7 = vector.load %arg2[%c0_4, %c0_5, %c0_6] : memref<2x32x256xf32, #tpu.memory_space<vmem>>, vector<1x32x256xf32>
    %8 = vector.shape_cast %7 : vector<1x32x256xf32> to vector<32x256xf32>
    %c0_7 = arith.constant 0 : index
    %c0_8 = arith.constant 0 : index
    %c0_9 = arith.constant 0 : index
    %9 = vector.load %arg3[%c0_7, %c0_8, %c0_9] : memref<2x1x256xi32, #tpu.memory_space<vmem>>, vector<1x1x256xi32>
    %10 = vector.shape_cast %9 : vector<1x1x256xi32> to vector<1x256xi32>
    %11 = vector.broadcast %10 : vector<1x256xi32> to vector<8x256xi32>
    %12 = arith.cmpi eq, %11, %3 : vector<8x256xi32>
    %13 = arith.extui %12 : vector<8x256xi1> to vector<8x256xi32>
    %14 = arith.sitofp %13 : vector<8x256xi32> to vector<8x256xf32>
    %cst_10 = arith.constant dense<0.000000e+00> : vector<32x256xf32>
    %15 = tpu.matmul %5, %14, %cst_10 {dimension_numbers = #tpu.dot_dimension_numbers<[0], [0], [1], [1], [0, 1, 1, 1], [], []>} : vector<8x32xf32>, vector<8x256xf32>, vector<32x256xf32> -> vector<32x256xf32>
    %16 = arith.subf %8, %15 : vector<32x256xf32>
    %17 = arith.mulf %16, %16 : vector<32x256xf32>
    %cst_11 = arith.constant dense<0.000000e+00> : vector<1x256xf32>
    %18 = tpu.matmul %4, %17, %cst_11 {dimension_numbers = #tpu.dot_dimension_numbers<[1], [0], [0], [1], [0, 0, 1, 1], [], []>} : vector<1x32xf32>, vector<32x256xf32>, vector<1x256xf32> -> vector<1x256xf32>
    %19 = math.sqrt %18 : vector<1x256xf32>
    %cst_12 = arith.constant 5.000000e-01 : f32
    %20 = vector.broadcast %cst_12 : f32 to vector<1x256xf32>
    %21 = arith.subf %19, %20 : vector<1x256xf32>
    %cst_13 = arith.constant 0.000000e+00 : f32
    %22 = vector.broadcast %cst_13 : f32 to vector<1x256xf32>
    %23 = arith.cmpf ogt, %21, %22 : vector<1x256xf32>
    %24 = arith.mulf %21, %21 : vector<1x256xf32>
    %cst_14 = arith.constant 0.000000e+00 : f32
    %25 = vector.broadcast %cst_14 : f32 to vector<1x256xf32>
    %26 = arith.select %23, %24, %25 : vector<1x256xi1>, vector<1x256xf32>
    %cst_15 = arith.constant dense<0.000000e+00> : vector<1x256xf32>
    %27 = tpu.matmul %6, %14, %cst_15 {dimension_numbers = #tpu.dot_dimension_numbers<[1], [0], [0], [1], [0, 0, 1, 1], [], []>} : vector<1x8xf32>, vector<8x256xf32>, vector<1x256xf32> -> vector<1x256xf32>
    %28 = arith.mulf %26, %27 : vector<1x256xf32>
    %29 = vector.shape_cast %28 : vector<1x256xf32> to vector<1x1x256xf32>
    %cst_16 = arith.constant dense<0.000000e+00> : vector<1xf32>
    %30 = vector.multi_reduction <add>, %29, %cst_16 [1, 2] : vector<1x1x256xf32> to vector<1xf32>
    %31 = vector.shape_cast %30 : vector<1xf32> to vector<1x1x1xf32>
    %32 = vector.extract %31[0, 0, 0] : f32 from vector<1x1x1xf32>
    %cst_17 = arith.constant 0.000000e+00 : f32
    %33 = arith.addf %cst_17, %32 : f32
    %c1 = arith.constant 1 : index
    %c0_18 = arith.constant 0 : index
    %c0_19 = arith.constant 0 : index
    %34 = vector.load %arg2[%c1, %c0_18, %c0_19] : memref<2x32x256xf32, #tpu.memory_space<vmem>>, vector<1x32x256xf32>
    %35 = vector.shape_cast %34 : vector<1x32x256xf32> to vector<32x256xf32>
    %c1_20 = arith.constant 1 : index
    %c0_21 = arith.constant 0 : index
    %c0_22 = arith.constant 0 : index
    %36 = vector.load %arg3[%c1_20, %c0_21, %c0_22] : memref<2x1x256xi32, #tpu.memory_space<vmem>>, vector<1x1x256xi32>
    %37 = vector.shape_cast %36 : vector<1x1x256xi32> to vector<1x256xi32>
    %38 = vector.broadcast %37 : vector<1x256xi32> to vector<8x256xi32>
    %39 = arith.cmpi eq, %38, %3 : vector<8x256xi32>
    %40 = arith.extui %39 : vector<8x256xi1> to vector<8x256xi32>
    %41 = arith.sitofp %40 : vector<8x256xi32> to vector<8x256xf32>
    %cst_23 = arith.constant dense<0.000000e+00> : vector<32x256xf32>
    %42 = tpu.matmul %5, %41, %cst_23 {dimension_numbers = #tpu.dot_dimension_numbers<[0], [0], [1], [1], [0, 1, 1, 1], [], []>} : vector<8x32xf32>, vector<8x256xf32>, vector<32x256xf32> -> vector<32x256xf32>
    %43 = arith.subf %35, %42 : vector<32x256xf32>
    %44 = arith.mulf %43, %43 : vector<32x256xf32>
    %cst_24 = arith.constant dense<0.000000e+00> : vector<1x256xf32>
    %45 = tpu.matmul %4, %44, %cst_24 {dimension_numbers = #tpu.dot_dimension_numbers<[1], [0], [0], [1], [0, 0, 1, 1], [], []>} : vector<1x32xf32>, vector<32x256xf32>, vector<1x256xf32> -> vector<1x256xf32>
    %46 = math.sqrt %45 : vector<1x256xf32>
    %cst_25 = arith.constant 5.000000e-01 : f32
    %47 = vector.broadcast %cst_25 : f32 to vector<1x256xf32>
    %48 = arith.subf %46, %47 : vector<1x256xf32>
    %cst_26 = arith.constant 0.000000e+00 : f32
    %49 = vector.broadcast %cst_26 : f32 to vector<1x256xf32>
    %50 = arith.cmpf ogt, %48, %49 : vector<1x256xf32>
    %51 = arith.mulf %48, %48 : vector<1x256xf32>
    %cst_27 = arith.constant 0.000000e+00 : f32
    %52 = vector.broadcast %cst_27 : f32 to vector<1x256xf32>
    %53 = arith.select %50, %51, %52 : vector<1x256xi1>, vector<1x256xf32>
    %cst_28 = arith.constant dense<0.000000e+00> : vector<1x256xf32>
    %54 = tpu.matmul %6, %41, %cst_28 {dimension_numbers = #tpu.dot_dimension_numbers<[1], [0], [0], [1], [0, 0, 1, 1], [], []>} : vector<1x8xf32>, vector<8x256xf32>, vector<1x256xf32> -> vector<1x256xf32>
    %55 = arith.mulf %53, %54 : vector<1x256xf32>
    %56 = vector.shape_cast %55 : vector<1x256xf32> to vector<1x1x256xf32>
    %cst_29 = arith.constant dense<0.000000e+00> : vector<1xf32>
    %57 = vector.multi_reduction <add>, %56, %cst_29 [1, 2] : vector<1x1x256xf32> to vector<1xf32>
    %58 = vector.shape_cast %57 : vector<1xf32> to vector<1x1x1xf32>
    %59 = vector.extract %58[0, 0, 0] : f32 from vector<1x1x1xf32>
    %60 = arith.addf %33, %59 : f32
    %c0_30 = arith.constant 0 : index
    %c0_31 = arith.constant 0 : index
    %c0_32 = arith.constant 0 : index
    %61 = vector.load %arg6[%c0_30, %c0_31, %c0_32] : memref<1x1x1xf32, #tpu.memory_space<vmem>>, vector<1x1x1xf32>
    %62 = vector.shape_cast %61 : vector<1x1x1xf32> to vector<1x1xf32>
    %63 = vector.broadcast %60 : f32 to vector<1x1xf32>
    %64 = arith.addf %62, %63 : vector<1x1xf32>
    %c0_33 = arith.constant 0 : index
    %c0_34 = arith.constant 0 : index
    %c0_35 = arith.constant 0 : index
    %65 = vector.load %arg6[%c0_33, %c0_34, %c0_35] : memref<1x1x1xf32, #tpu.memory_space<vmem>>, vector<1x1x1xf32>
    %66 = vector.shape_cast %65 : vector<1x1x1xf32> to vector<1x1xf32>
    %67 = vector.shape_cast %64 : vector<1x1xf32> to vector<1x1x1xf32>
    tpu.vector_store %arg6[%c0_33, %c0_34, %c0_35], %67 {strides = array<i32>} : memref<1x1x1xf32, #tpu.memory_space<vmem>>, vector<1x1x1xf32>,
    return
  }
  func.func @transform_0(%arg0: i32, %arg1: i32) -> (i32, i32, i32) {
    %c1_i32 = arith.constant 1 : i32
    %0 = arith.muli %arg0, %c1_i32 : i32
    %1 = arith.addi %0, %arg1 : i32
    %c0_i32 = arith.constant 0 : i32
    %2 = arith.minsi %1, %c0_i32 : i32
    %c0_i32_0 = arith.constant 0 : i32
    %c0_i32_1 = arith.constant 0 : i32
    %c0_i32_2 = arith.constant 0 : i32
    return %2, %c0_i32_0, %c0_i32_1 : i32, i32, i32
  }
  func.func @transform_1(%arg0: i32, %arg1: i32) -> (i32, i32, i32) {
    %c1_i32 = arith.constant 1 : i32
    %0 = arith.muli %arg0, %c1_i32 : i32
    %1 = arith.addi %0, %arg1 : i32
    %c0_i32 = arith.constant 0 : i32
    %2 = arith.minsi %1, %c0_i32 : i32
    %c0_i32_0 = arith.constant 0 : i32
    %c0_i32_1 = arith.constant 0 : i32
    %c0_i32_2 = arith.constant 0 : i32
    return %2, %c0_i32_0, %c0_i32_1 : i32, i32, i32
  }
  func.func @transform_2(%arg0: i32, %arg1: i32) -> (i32, i32) {
    %c0_i32 = arith.constant 0 : i32
    %c0_i32_0 = arith.constant 0 : i32
    %c0_i32_1 = arith.constant 0 : i32
    return %c0_i32, %c0_i32_0 : i32, i32
  }
  func.func @transform_3(%arg0: i32, %arg1: i32) -> (i32, i32) {
    %c0_i32 = arith.constant 0 : i32
    %c0_i32_0 = arith.constant 0 : i32
    %c0_i32_1 = arith.constant 0 : i32
    return %c0_i32, %c0_i32_0 : i32, i32
  }
  func.func @transform_4(%arg0: i32, %arg1: i32) -> (i32, i32, i32) {
    %c0_i32 = arith.constant 0 : i32
    %c0_i32_0 = arith.constant 0 : i32
    %c0_i32_1 = arith.constant 0 : i32
    return %arg0, %c0_i32, %c0_i32_0 : i32, i32, i32
  }
}

</mosaic_0001>

<bundles_post_ra>
// kernel: discrim_loss.2
= control target key start
LH: loop header
LB: loop body
LE: loop exit
PB: predicated region body
PF: predicated region fallthrough
CT: control target
= control target key end

     0   :  { %v88_v0 = vlaneseq  ;;  %v261_v22 = vmov 0.0   ;;  %v262_v33 = vmov 1.0   ;;  %vm86_vm4 = vcmask 7168   ;;  %s373_s0 = inlined_call_operand.vmem [shape: f32[2,32,256], index: 0, kind: input, shape index: {}]   ;;  %s374_s1 = inlined_call_operand.vmem [shape: s32[2,1,256], index: 1, kind: input, shape index: {}]   ;;  %s375_s3 = inlined_call_operand.vmem [shape: f32[1,8,1], index: 3, kind: output, shape index: {1}]   ;;  %s376_s2 = inlined_call_operand.vmem [shape: f32[1,8,32], index: 2, kind: output, shape index: {0}]  }
   0x1   :  { %v96_v1 = vld [vmem:[%s373_s0 + $0x30] sm:$0xff]  ;;  %v97_v2 = vld [vmem:[%s373_s0 + $0x38] sm:$0xff]  ;;  %v94_v5 = vld [vmem:[%s373_s0 + $0x20] sm:$0xff]  ;;  %87 = vst.msk [vmem:[%s375_s3] sm:$0xff] %vm86_vm4, %v261_v22  ;;  %vm84_vm5 = vcmask 261120  }
   0x2   :  { %v250_v3 = vld [vmem:[%s373_s0 + $0x70] sm:$0xff]  ;;  %182 = vmatpush.xpose.msra.mxu2 %v96_v1  ;;  %202 = vmatpush.xpose.msra.mxu3 %v97_v2  ;;  %v251_v4 = vld [vmem:[%s373_s0 + $0x78] sm:$0xff]  ;;  %v95_v6 = vld [vmem:[%s373_s0 + $0x28] sm:$0xff]  ;;  %v89_v9 = vshrl.u32 %v88_v0, 7  ;;  %85 = vst.msk [vmem:[%s376_s2] sm:$0xff] %vm84_vm5, %v261_v22 }
   0x3   :  { %142 = vmatpush.xpose.msra.mxu0 %v250_v3  ;;  %162 = vmatpush.xpose.msra.mxu1 %v251_v4  ;;  %v248_v7 = vld [vmem:[%s373_s0 + $0x60] sm:$0xff]  ;;  %v249_v8 = vld [vmem:[%s373_s0 + $0x68] sm:$0xff]  ;;  %v92_v14 = vld [vmem:[%s373_s0 + $0x10] sm:$0xff] }
   0x4   :  { %v98_v10 = vld [vmem:[%s374_s1] sm:$0x3]  ;;  %v252_v13 = vld [vmem:[%s374_s1 + $0x2] sm:$0x3]  ;;  %v93_v15 = vld [vmem:[%s373_s0 + $0x18] sm:$0xff] }
   0x5   :  { %v99_v11 = vperm.slane %v98_v10, 0  ;;  %v100_v12 = vperm.slane %v98_v10, 1  ;;  %v246_v16 = vld [vmem:[%s373_s0 + $0x50] sm:$0xff]  ;;  %v247_v17 = vld [vmem:[%s373_s0 + $0x58] sm:$0xff]  ;;  %v122_v20 = vperm.slane %v252_v13, 0  ;;  %v123_v21 = vperm.slane %v252_v13, 1 }
   0x6   :  { %183 = vmatpush.xpose.msra.mxu2 %v94_v5  ;;  %203 = vmatpush.xpose.msra.mxu3 %v95_v6  ;;  %v90_v26 = vld [vmem:[%s373_s0] sm:$0xff]  ;;  %v91_v27 = vld [vmem:[%s373_s0 + $0x8] sm:$0xff] }
   0x7   :  { %143 = vmatpush.xpose.msra.mxu0 %v248_v7  ;;  %163 = vmatpush.xpose.msra.mxu1 %v249_v8  ;;  %vm325_vm0 = vcmp.eq.s32.totalorder %v99_v11, %v89_v9  ;;  %vm329_vm1 = vcmp.eq.s32.totalorder %v100_v12, %v89_v9  ;;  %v244_v28 = vld [vmem:[%s373_s0 + $0x40] sm:$0xff]  ;;  %v245_v29 = vld [vmem:[%s373_s0 + $0x48] sm:$0xff]  ;;  %vm124_vm2 = vcmp.eq.s32.totalorder %v122_v20, %v89_v9 }
   0x8   :  { %v242_v23 = vsel %vm325_vm0, 1.0, %v261_v22  ;;  %v243_v24 = vsel %vm329_vm1, 1.0, %v261_v22  ;;  %vm125_vm3 = vcmp.eq.s32.totalorder %v123_v21, %v89_v9  ;;  %v253_v30 = vsel %vm124_vm2, 1.0, %v261_v22  ;;  %v218_v35 = vld [vmem:[%s375_s3] sm:$0xff] }
   0x9   :  { %v107_v25 = vadd.f32 %v243_v24, %v242_v23  ;;  %v254_v31 = vsel %vm125_vm3, 1.0, %v261_v22  ;;  %v214_v45 = vld [vmem:[%s376_s2] sm:$0xff] }
   0xa   :  { %184 = vmatpush.xpose.msra.mxu2 %v92_v14  ;;  %204 = vmatpush.xpose.msra.mxu3 %v93_v15  ;;  %v210_v32 = vadd.f32 %v254_v31, %v253_v30 }
   0xb   :  { %144 = vmatpush.xpose.msra.mxu0 %v246_v16  ;;  %164 = vmatpush.xpose.msra.mxu1 %v247_v17 }
   0xc   :  { %108 = vadd.xlane.f32.xlu0 %v107_v25 }
   0xe   :  { %185 = vmatpush.xpose.msra.mxu2 %v90_v26  ;;  %205 = vmatpush.xpose.msra.mxu3 %v91_v27 }
   0xf   :  { %145 = vmatpush.xpose.msra.mxu0 %v244_v28  ;;  %165 = vmatpush.xpose.msra.mxu1 %v245_v29 }
  0x11   :  { %257 = vmatmul.msk.f32.vlgmr.msra.gmra.mxu2 %vm325_vm0, %v262_v33  ;;  %258 = vmatmul.msk.f32.vlgmr.msra.gmra.mxu3 %vm329_vm1, %v262_v33 }
  0x12   :  { %255 = vmatmul.msk.f32.vlgmr.msra.gmra.mxu0 %vm124_vm2, %v262_v33  ;;  %256 = vmatmul.msk.f32.vlgmr.msra.gmra.mxu1 %vm125_vm3, %v262_v33 }
  0x14   :  { %211 = vadd.xlane.f32.xlu0 %v210_v32 }
  0x7f   :  { %v109_v34 = vpop.xlane.xlu0 %108 }
  0x87   :  { %v212_v36 = vpop.xlane.xlu0 %211 }
  0x88   :  { %v213_v37 = vadd.f32 %v212_v36, %v109_v34 }
  0x8a   :  { %v219_v38 = vadd.f32 %v218_v35, %v213_v37 }
  0x8c   :  { %221 = vst.msk [vmem:[%s375_s3] sm:$0xff] %vm86_vm4, %v219_v38 }
  0x8f   :  { %v147_v39 = vpop.f32.mrf.mxu0  ;;  %v167_v40 = vpop.f32.mrf.mxu1 }
  0x90   :  { %v168_v41 = vadd.f32 %v167_v40, %v147_v39 }
  0x94   :  { %v187_v42 = vpop.f32.mrf.mxu2  ;;  %v207_v43 = vpop.f32.mrf.mxu3 }
  0x95   :  { %v188_v44 = vadd.f32 %v187_v42, %v168_v41 }
  0x97   :  { %v208_v46 = vadd.f32 %v207_v43, %v188_v44 }
  0x99   :  { %v215_v47 = vadd.f32 %v214_v45, %v208_v46 }
  0x9b   :  { %217 = vst.msk [vmem:[%s376_s2] sm:$0xff] %vm84_vm5, %v215_v47 }

// kernel: discrim_loss.3
= control target key start
LH: loop header
LB: loop body
LE: loop exit
PB: predicated region body
PF: predicated region fallthrough
CT: control target
= control target key end

     0   :  { %s910_s0 = inlined_call_operand.vmem [shape: f32[2,32,256], index: 0, kind: input, shape index: {}]   ;;  %s911_s1 = inlined_call_operand.vmem [shape: s32[2,1,256], index: 1, kind: input, shape index: {}]   ;;  %s912_s2 = inlined_call_operand.vmem [shape: f32[8,32], index: 2, kind: input, shape index: {}]   ;;  %s913_s3 = inlined_call_operand.vmem [shape: f32[1,8], index: 3, kind: input, shape index: {}]   ;;  %s914_s4 = inlined_call_operand.hbm [shape: f32[1,1,1], index: 4, kind: output, shape index: {}]  }
   0x1   :  { %v93_v0 = vld [vmem:[%s912_s2] sm:$0xff] }
   0x2   :  { %9 = vsyncpa [#allocation3], 0  ;;  %112 = vxpose.xlu0.b32.start.end [1/1] (short) (narrow) %v93_v0, 32  ;;  %v91_v1 = vlaneseq  ;;  %v103_v2 = vld [vmem:[%s911_s1] sm:$0x3]  ;;  %v709_v8 = vmov 1.0  }
   0x3   :  { %v104_v4 = vperm.slane %v103_v2, 0  ;;  %v105_v5 = vperm.slane %v103_v2, 1  ;;  %vm144_vm2 = vcmask 64512   ;;  %v99_v19 = vld [vmem:[%s910_s0 + $0x20] sm:$0xff]  ;;  %v100_v20 = vld [vmem:[%s910_s0 + $0x28] sm:$0xff]  ;;  %v101_v21 = vld [vmem:[%s910_s0 + $0x30] sm:$0xff] }
   0x4   :  { %v743_v3 = vshrl.u32 %v91_v1, 7  ;;  %v102_v22 = vld [vmem:[%s910_s0 + $0x38] sm:$0xff]  ;;  %v97_v23 = vld [vmem:[%s910_s0 + $0x10] sm:$0xff]  ;;  %v95_v27 = vld [vmem:[%s910_s0] sm:$0xff]  ;;  %vm231_vm3 = vcmask 261120   ;;  %vm352_vm12 = vcmask 1040384  }
   0x5   :  { %v98_v24 = vld [vmem:[%s910_s0 + $0x18] sm:$0xff]  ;;  %v96_v32 = vld [vmem:[%s910_s0 + $0x8] sm:$0xff]  ;;  %v647_v38 = vld [vmem:[%s911_s1 + $0x2] sm:$0x3]  ;;  %s711_s26 = smov [#allocation2]   ;;  %s598_s5 = sshll.u32 %s914_s4, 4  ;;  %s599_s5 = int_to_ptr.hbm [resolvable:$true] %s598_s5 }
   0x6   :  { %vm746_vm0 = vcmp.eq.s32.totalorder %v104_v4, %v743_v3  ;;  %vm751_vm1 = vcmp.eq.s32.totalorder %v105_v5, %v743_v3  ;;  %v377_v44 = vperm.slane %v647_v38, 0  ;;  %v378_v45 = vperm.slane %v647_v38, 1  ;;  %v841_v50 = vld [vmem:[%s913_s3] sm:$0x1]  ;;  %s596_s27 = sshll.u32 %s711_s26, 4  ;;  %s597_s27 = int_to_ptr.vmem [resolvable:$true] %s596_s27 }
   0x7   :  { %621 = vmatpush.msk.msra.mxu0 %vm746_vm0, %v709_v8  ;;  %626 = vmatpush.msk.msra.mxu1 %vm751_vm1, %v709_v8 }
   0x8   :  { %vm813_vm4 = vcmp.eq.s32.totalorder %v377_v44, %v743_v3  ;;  %vm818_vm5 = vcmp.eq.s32.totalorder %v378_v45, %v743_v3 }
  0xa6   :  { %v761_v9 = vpop.trf.xlu0 }
  0xa7   :  { %622 = vmatmul.msk.f32.vlgmr.msra.gmra.mxu0 %vm144_vm2, %v761_v9  ;;  %627 = vmatmul.msk.f32.vlgmr.msra.gmra.mxu1 %vm144_vm2, %v761_v9 }
  0xae   :  { %v767_v10 = vpop.trf.xlu0 }
  0xaf   :  { %623 = vmatmul.msk.f32.gmra.mxu0 %vm144_vm2, %v767_v10  ;;  %628 = vmatmul.msk.f32.gmra.mxu1 %vm144_vm2, %v767_v10 }
  0xb6   :  { %v773_v11 = vpop.trf.xlu0 }
  0xb7   :  { %624 = vmatmul.msk.f32.gmra.mxu0 %vm144_vm2, %v773_v11  ;;  %629 = vmatmul.msk.f32.gmra.mxu1 %vm144_vm2, %v773_v11 }
  0xbe   :  { %v779_v12 = vpop.trf.xlu0 }
  0xbf   :  { %625 = vmatmul.msk.f32.gmra.mxu0 %vm144_vm2, %v779_v12  ;;  %630 = vmatmul.msk.f32.gmra.mxu1 %vm144_vm2, %v779_v12 }
 0x124   :  { %v174_v13 = vpop.f32.mrf.mxu0  ;;  %v203_v14 = vpop.f32.mrf.mxu1 }
 0x125   :  { %v215_v37 = vsub.f32 %v95_v27, %v174_v13  ;;  %v216_v39 = vsub.f32 %v96_v32, %v203_v14  ;;  %v646_v32 = vld [vmem:[%s910_s0 + $0x78] sm:$0xff] }
 0x127   :  { %v223_v46 = vmul.f32 %v215_v37, %v215_v37  ;;  %v224_v47 = vmul.f32 %v216_v39, %v216_v39  ;;  %v639_v37 = vld [vmem:[%s910_s0 + $0x40] sm:$0xff] }
 0x12c   :  { %v177_v15 = vpop.f32.mrf.mxu0  ;;  %v206_v16 = vpop.f32.mrf.mxu1 }
 0x12d   :  { %v217_v33 = vsub.f32 %v97_v23, %v177_v15  ;;  %v218_v34 = vsub.f32 %v98_v24, %v206_v16 }
 0x12f   :  { %v225_v42 = vmul.f32 %v217_v33, %v217_v33  ;;  %v226_v43 = vmul.f32 %v218_v34, %v218_v34  ;;  %v641_v33 = vld [vmem:[%s910_s0 + $0x50] sm:$0xff]  ;;  %v642_v34 = vld [vmem:[%s910_s0 + $0x58] sm:$0xff] }
 0x134   :  { %v180_v17 = vpop.f32.mrf.mxu0  ;;  %v209_v18 = vpop.f32.mrf.mxu1 }
 0x135   :  { %v219_v28 = vsub.f32 %v99_v19, %v180_v17  ;;  %v220_v29 = vsub.f32 %v100_v20, %v209_v18 }
 0x137   :  { %v227_v40 = vmul.f32 %v219_v28, %v219_v28  ;;  %v228_v41 = vmul.f32 %v220_v29, %v220_v29  ;;  %v643_v29 = vld [vmem:[%s910_s0 + $0x60] sm:$0xff] }
 0x13c   :  { %v183_v25 = vpop.f32.mrf.mxu0  ;;  %v212_v26 = vpop.f32.mrf.mxu1 }
 0x13d   :  { %v221_v30 = vsub.f32 %v101_v21, %v183_v25  ;;  %v222_v31 = vsub.f32 %v102_v22, %v212_v26 }
 0x13f   :  { %v229_v35 = vmul.f32 %v221_v30, %v221_v30  ;;  %v230_v36 = vmul.f32 %v222_v31, %v222_v31  ;;  %v644_v30 = vld [vmem:[%s910_s0 + $0x68] sm:$0xff]  ;;  %v645_v31 = vld [vmem:[%s910_s0 + $0x70] sm:$0xff] }
 0x141   :  { %247 = vmatpush.msra.mxu2 %v229_v35  ;;  %267 = vmatpush.msra.mxu3 %v230_v36 }
 0x143   :  { %248 = vmatpush.msra.mxu2 %v227_v40  ;;  %268 = vmatpush.msra.mxu3 %v228_v41 }
 0x145   :  { %249 = vmatpush.msra.mxu2 %v225_v42  ;;  %269 = vmatpush.msra.mxu3 %v226_v43  ;;  %v640_v42 = vld [vmem:[%s910_s0 + $0x48] sm:$0xff] }
 0x147   :  { %250 = vmatpush.msra.mxu2 %v223_v46  ;;  %270 = vmatpush.msra.mxu3 %v224_v47 }
 0x148   :  { %631 = vmatmul.msk.f32.vlgmr.msra.gmra.mxu2 %vm231_vm3, %v709_v8  ;;  %632 = vmatmul.msk.f32.vlgmr.msra.gmra.mxu3 %vm231_vm3, %v709_v8 }
 0x149   :  { %635 = vmatpush.msk.msrb.mxu2 %vm746_vm0, %v709_v8  ;;  %637 = vmatpush.msk.msrb.mxu3 %vm751_vm1, %v709_v8 }
 0x14b   :  { %650 = vmatpush.msk.msra.mxu2 %vm813_vm4, %v709_v8  ;;  %655 = vmatpush.msk.msra.mxu3 %vm818_vm5, %v709_v8 }
 0x150   :  { %636 = vmatmul.msk.f32.vlgmr.msrb.gmra.mxu2 %vm144_vm2, %v841_v50  ;;  %638 = vmatmul.msk.f32.vlgmr.msrb.gmra.mxu3 %vm144_vm2, %v841_v50 }
 0x158   :  { %651 = vmatmul.msk.f32.vlgmr.msra.gmra.mxu2 %vm144_vm2, %v761_v9  ;;  %656 = vmatmul.msk.f32.vlgmr.msra.gmra.mxu3 %vm144_vm2, %v761_v9 }
 0x160   :  { %652 = vmatmul.msk.f32.gmra.mxu2 %vm144_vm2, %v767_v10  ;;  %657 = vmatmul.msk.f32.gmra.mxu3 %vm144_vm2, %v767_v10 }
 0x168   :  { %653 = vmatmul.msk.f32.gmra.mxu2 %vm144_vm2, %v773_v11  ;;  %658 = vmatmul.msk.f32.gmra.mxu3 %vm144_vm2, %v773_v11 }
 0x170   :  { %654 = vmatmul.msk.f32.gmra.mxu2 %vm144_vm2, %v779_v12  ;;  %659 = vmatmul.msk.f32.gmra.mxu3 %vm144_vm2, %v779_v12 }
 0x1cb   :  { %v252_v51 = vpop.f32.mrf.mxu2  ;;  %v272_v52 = vpop.f32.mrf.mxu3 }
 0x1cc   :  { %675 = vrsqrt.f32 %v252_v51  ;;  %vm282_vm6 = vcmp.eq.f32.partialorder %v252_v51, inf  ;;  %v285_v6 = vand.u32 2147483648, %v252_v51  ;;  %vm284_vm7 = vcmp.eq.f32.partialorder %v252_v51, 0.0 }
 0x1cd   :  { %677 = vrsqrt.f32 %v272_v52  ;;  %vm294_vm8 = vcmp.eq.f32.partialorder %v272_v52, inf  ;;  %v297_v10 = vand.u32 2147483648, %v272_v52  ;;  %vm296_vm9 = vcmp.eq.f32.partialorder %v272_v52, 0.0 }
 0x1d2   :  { %v676_v53 = vpop.eup %675 }
 0x1d3   :  { %v678_v54 = vpop.eup %677  ;;  %v276_v55 = vmul.f32 %v676_v53, %v252_v51  ;;  %v327_v56 = vpop.f32.mrf.mxu2 }
 0x1d4   :  { %v347_v57 = vpop.f32.mrf.mxu3  ;;  %v288_v58 = vmul.f32 %v678_v54, %v272_v52 }
 0x1d5   :  { %v277_v59 = vmul.f32 %v676_v53, %v276_v55 }
 0x1d6   :  { %v289_v60 = vmul.f32 %v678_v54, %v288_v58 }
 0x1d7   :  { %v278_v61 = vmul.f32 0.5, %v277_v59 }
 0x1d8   :  { %v290_v62 = vmul.f32 0.5, %v289_v60 }
 0x1d9   :  { %v279_v63 = vsub.f32 1.5, %v278_v61 }
 0x1da   :  { %v291_v0 = vsub.f32 1.5, %v290_v62 }
 0x1db   :  { %v280_v1 = vmul.f32 %v676_v53, %v279_v63  ;;  %v402_v2 = vpop.f32.mrf.mxu2 }
 0x1dc   :  { %v431_v3 = vpop.f32.mrf.mxu3  ;;  %v292_v4 = vmul.f32 %v678_v54, %v291_v0  ;;  %v443_v47 = vsub.f32 %v639_v37, %v402_v2 }
 0x1dd   :  { %v281_v5 = vmul.f32 %v280_v1, %v252_v51 }
 0x1de   :  { %v293_v7 = vmul.f32 %v292_v4, %v272_v52 }
 0x1df   :  { %v283_v9 = vsel %vm282_vm6, %v252_v51, %v281_v5  ;;  %v444_v51 = vsub.f32 %v640_v42, %v431_v3 }
 0x1e0   :  { %v286_v11 = vsel %vm284_vm7, %v285_v6, %v283_v9  ;;  %v295_v12 = vsel %vm294_vm8, %v272_v52, %v293_v7 }
 0x1e1   :  { %v633_v13 = vadd.f32 -0.5, %v286_v11  ;;  %v298_v14 = vsel %vm296_vm9, %v297_v10, %v295_v12 }
 0x1e2   :  { %v634_v15 = vadd.f32 -0.5, %v298_v14 }
 0x1e3   :  { %vm301_vm10 = vcmp.gt.f32.partialorder %v633_v13, 0.0  ;;  %v303_v16 = vmul.f32 %v633_v13, %v633_v13  ;;  %v405_v17 = vpop.f32.mrf.mxu2 }
 0x1e4   :  { %v434_v18 = vpop.f32.mrf.mxu3  ;;  %vm302_vm11 = vcmp.gt.f32.partialorder %v634_v15, 0.0  ;;  %v304_v19 = vmul.f32 %v634_v15, %v634_v15  ;;  %v445_v43 = vsub.f32 %v641_v33, %v405_v17  ;;  %v710_v33 = vmov 0.0  }
 0x1e5   :  { %v305_v20 = vsel %vm301_vm10, %v303_v16, 0.0  ;;  %v446_v44 = vsub.f32 %v642_v34, %v434_v18 }
 0x1e6   :  { %v350_v21 = vmul.f32 %v327_v56, %v305_v20  ;;  %v306_v22 = vsel %vm302_vm11, %v304_v19, 0.0  ;;  %v453_v54 = vmul.f32 %v445_v43, %v445_v43  ;;  %v451_v56 = vmul.f32 %v443_v47, %v443_v47 }
 0x1e7   :  { %v351_v23 = vmul.f32 %v347_v57, %v306_v22  ;;  %v454_v55 = vmul.f32 %v446_v44, %v446_v44  ;;  %v452_v57 = vmul.f32 %v444_v51, %v444_v51 }
 0x1e8   :  { %v353_v24 = vsel %vm352_vm12, %v350_v21, 0.0 }
 0x1e9   :  { %v354_v25 = vsel %vm352_vm12, %v351_v23, 0.0 }
 0x1ea   :  { %v355_v26 = vadd.f32 %v354_v25, %v353_v24 }
 0x1eb   :  { %v408_v27 = vpop.f32.mrf.mxu2 }
 0x1ec   :  { %v437_v28 = vpop.f32.mrf.mxu3  ;;  %356 = vadd.xlane.f32.xlu0 %v355_v26  ;;  %v447_v38 = vsub.f32 %v643_v29, %v408_v27 }
 0x1ed   :  { %v448_v39 = vsub.f32 %v644_v30, %v437_v28 }
 0x1ee   :  { %v455_v52 = vmul.f32 %v447_v38, %v447_v38 }
 0x1ef   :  { %v456_v53 = vmul.f32 %v448_v39, %v448_v39 }
 0x1f3   :  { %v411_v35 = vpop.f32.mrf.mxu2 }
 0x1f4   :  { %v440_v36 = vpop.f32.mrf.mxu3  ;;  %v449_v40 = vsub.f32 %v645_v31, %v411_v35 }
 0x1f5   :  { %v450_v41 = vsub.f32 %v646_v32, %v440_v36 }
 0x1f6   :  { %v457_v45 = vmul.f32 %v449_v40, %v449_v40 }
 0x1f7   :  { %v458_v46 = vmul.f32 %v450_v41, %v450_v41 }
 0x1f8   :  { %471 = vmatpush.msrb.mxu0 %v457_v45 }
 0x1f9   :  { %491 = vmatpush.msrb.mxu1 %v458_v46 }
 0x1fa   :  { %472 = vmatpush.msrb.mxu0 %v455_v52 }
 0x1fb   :  { %492 = vmatpush.msrb.mxu1 %v456_v53 }
 0x1fc   :  { %473 = vmatpush.msrb.mxu0 %v453_v54 }
 0x1fd   :  { %493 = vmatpush.msrb.mxu1 %v454_v55 }
 0x1fe   :  { %474 = vmatpush.msrb.mxu0 %v451_v56 }
 0x1ff   :  { %494 = vmatpush.msrb.mxu1 %v452_v57  ;;  %660 = vmatmul.msk.f32.vlgmr.msrb.gmra.mxu0 %vm231_vm3, %v709_v8 }
 0x200   :  { %661 = vmatmul.msk.f32.vlgmr.msrb.gmra.mxu1 %vm231_vm3, %v709_v8  ;;  %664 = vmatpush.msk.msra.mxu0 %vm813_vm4, %v709_v8  ;;  %vm89_vm3 = vcmask 0  }
 0x201   :  { %666 = vmatpush.msk.msra.mxu1 %vm818_vm5, %v709_v8  ;;  %90 = vst.msk [vmem:[#allocation2] sm:$0x1] %vm89_vm3, %v710_v33 }
 0x207   :  { %665 = vmatmul.msk.f32.vlgmr.msra.gmra.mxu0 %vm144_vm2, %v841_v50 }
 0x208   :  { %667 = vmatmul.msk.f32.vlgmr.msra.gmra.mxu1 %vm144_vm2, %v841_v50  ;;  %v586_v41 = vld [vmem:[#allocation2] sm:$0x1] }
 0x25f   :  { %v357_v58 = vpop.xlane.xlu0 %356 }
 0x260   :  { %v358_v59 = vrot.slane %v357_v58, 4 }
 0x262   :  { %v359_v60 = vadd.f32 %v358_v59, %v357_v58 }
 0x264   :  { %v360_v61 = vrot.slane %v359_v60, 2 }
 0x266   :  { %v361_v62 = vadd.f32 %v360_v61, %v359_v60 }
 0x268   :  { %v362_v63 = vrot.slane %v361_v62, 1 }
 0x26a   :  { %v363_v0 = vadd.f32 %v362_v63, %v361_v62 }
 0x26c   :  { %668 = vpush %v363_v0 }
 0x27c   :  { %v476_v48 = vpop.f32.mrf.mxu0 }
 0x27d   :  { %v496_v1 = vpop.f32.mrf.mxu1  ;;  %679 = vrsqrt.f32 %v476_v48  ;;  %vm506_vm13 = vcmp.eq.f32.partialorder %v476_v48, inf  ;;  %v509_v13 = vand.u32 2147483648, %v476_v48  ;;  %vm508_vm14 = vcmp.eq.f32.partialorder %v476_v48, 0.0 }
 0x27e   :  { %681 = vrsqrt.f32 %v496_v1  ;;  %vm518_vm15 = vcmp.eq.f32.partialorder %v496_v1, inf  ;;  %v521_v16 = vand.u32 2147483648, %v496_v1  ;;  %vm520_vm0 = vcmp.eq.f32.partialorder %v496_v1, 0.0 }
 0x283   :  { %v680_v49 = vpop.eup %679 }
 0x284   :  { %v682_v8 = vpop.eup %681  ;;  %v500_v2 = vmul.f32 %v680_v49, %v476_v48  ;;  %v548_v23 = vpop.f32.mrf.mxu0 }
 0x285   :  { %v512_v3 = vmul.f32 %v682_v8, %v496_v1  ;;  %v568_v25 = vpop.f32.mrf.mxu1 }
 0x286   :  { %v501_v4 = vmul.f32 %v680_v49, %v500_v2 }
 0x287   :  { %v513_v5 = vmul.f32 %v682_v8, %v512_v3 }
 0x288   :  { %v502_v6 = vmul.f32 0.5, %v501_v4 }
 0x289   :  { %v514_v50 = vmul.f32 0.5, %v513_v5 }
 0x28a   :  { %v503_v7 = vsub.f32 1.5, %v502_v6 }
 0x28b   :  { %v515_v9 = vsub.f32 1.5, %v514_v50 }
 0x28c   :  { %v504_v10 = vmul.f32 %v680_v49, %v503_v7 }
 0x28d   :  { %v516_v11 = vmul.f32 %v682_v8, %v515_v9 }
 0x28e   :  { %v505_v12 = vmul.f32 %v504_v10, %v476_v48 }
 0x28f   :  { %v517_v14 = vmul.f32 %v516_v11, %v496_v1 }
 0x290   :  { %v507_v15 = vsel %vm506_vm13, %v476_v48, %v505_v12 }
 0x291   :  { %v510_v17 = vsel %vm508_vm14, %v509_v13, %v507_v15  ;;  %v519_v18 = vsel %vm518_vm15, %v496_v1, %v517_v14 }
 0x292   :  { %v662_v19 = vadd.f32 -0.5, %v510_v17  ;;  %v522_v20 = vsel %vm520_vm0, %v521_v16, %v519_v18 }
 0x293   :  { %v663_v21 = vadd.f32 -0.5, %v522_v20 }
 0x294   :  { %vm525_vm1 = vcmp.gt.f32.partialorder %v662_v19, 0.0  ;;  %v527_v22 = vmul.f32 %v662_v19, %v662_v19 }
 0x295   :  { %vm526_vm2 = vcmp.gt.f32.partialorder %v663_v21, 0.0  ;;  %v528_v24 = vmul.f32 %v663_v21, %v663_v21 }
 0x296   :  { %v529_v26 = vsel %vm525_vm1, %v527_v22, 0.0 }
 0x297   :  { %v571_v27 = vmul.f32 %v548_v23, %v529_v26  ;;  %v530_v28 = vsel %vm526_vm2, %v528_v24, 0.0 }
 0x298   :  { %v572_v29 = vmul.f32 %v568_v25, %v530_v28 }
 0x299   :  { %v573_v30 = vsel %vm352_vm12, %v571_v27, 0.0 }
 0x29a   :  { %v574_v31 = vsel %vm352_vm12, %v572_v29, 0.0 }
 0x29b   :  { %v575_v32 = vadd.f32 %v574_v31, %v573_v30 }
 0x29d   :  { %576 = vadd.xlane.f32.xlu1 %v575_v32  ;;  %s669_s0 = spop %668 }
 0x310   :  { %v577_v34 = vpop.xlane.xlu1 %576 }
 0x311   :  { %v578_v35 = vrot.slane %v577_v34, 4 }
 0x313   :  { %v579_v36 = vadd.f32 %v578_v35, %v577_v34 }
 0x315   :  { %v580_v37 = vrot.slane %v579_v36, 2 }
 0x317   :  { %v581_v38 = vadd.f32 %v580_v37, %v579_v36 }
 0x319   :  { %v582_v39 = vrot.slane %v581_v38, 1 }
 0x31b   :  { %v583_v40 = vadd.f32 %v582_v39, %v581_v38 }
 0x31d   :  { %670 = vpush %v583_v40 }
 0x34e   :  { %s671_s25 = spop %670 }
 0x34f   :  { %s585_s28 = sadd.f32 %s671_s25, %s669_s0 }
 0x351   :  { %v587_v42 = vstv %s585_s28 }
 0x352   :  { %v588_v43 = vadd.f32 %v587_v42, %v586_v41 }
 0x354   :  { %590 = vst.msk [vmem:[#allocation2] sm:$0x1] %vm89_vm3, %v588_v43 }
 0x355   :  { %601 = dma.vmem_to_hbm [thread:$0]  %s597_s27, 16, %s599_s5, [#allocation3]  }
 0x356   :  { %707 = dma.done.wait [#allocation3], 16  }
 0x357   :  { %708 = vsyncadd [#allocation3], 4294967280 }
 0x358   :  { %606 = vsyncpa [#allocation3], 1 }

</bundles_post_ra>
